<compile_context>
chip_gen: v5e
topology: v5e:2x2
jax: 0.10.0
libtpu: 0.0.40
codegen_flags: <defaults>
</compile_context>

<pallas_src>
import numpy as np
import jax
import jax.numpy as jnp
from jax.experimental import pallas as pl
from jax.experimental.pallas import tpu as pltpu


def _round_up(v, m):
    return (v + m - 1) // m * m


def _vmem_capacity_bytes():
    """Physical per-core VMEM; conservative fallback if the query is unavailable."""
    try:
        info = pltpu.get_tpu_info()
        cap = getattr(info, "vmem_capacity_bytes", None)
        if cap:
            return int(cap)
    except Exception:
        pass
    return 64 * 1024 * 1024  # v7x per-TensorCore VMEM (smallest current gen)


def _choose_tiles(m, d, n_pad, in_item, out_item, r, budget):
    """Pick (tm, tn, tk) whose double-buffered working set fits `budget` bytes."""
    sub_min = {4: 8, 2: 16, 1: 32}.get(in_item, 8)   # dtype-packed sublane minimum
    if m >= 512:
        tm_cands = [512, 256, 128]
    elif m >= 256:
        tm_cands = [256, 128]
    elif m >= 128:
        tm_cands = [128]
    else:
        tm_cands = [_round_up(m, sub_min)]
    tn_cands = [t for t in (1024, 512, 256, 128) if n_pad % t == 0] or [n_pad]
    if d % 128 == 0:
        tk_cands = [t for t in (d, 4096, 2048, 1024, 512, 256)
                    if t <= d and d % t == 0]
        if not tk_cands:
            tk_cands = [d]
    else:
        tk_cands = [d]  # can't K-tile a non-128-multiple feature dim

    def vmem_bytes(tm, tn, tk):
        return (2 * in_item * (tm * tk + tk * tn + tm * r + r * tn)   # dbl-buffered ins
                + 2 * out_item * tm * tn                               # dbl-buffered out
                + 4 * tm * tn)                                         # f32 accumulator

    for tm in tm_cands:           # prefer large tm (compute window hides weight DMA)
        for tn in tn_cands:       # then wide, lane-dense N tiles
            for tk in tk_cands:   # then full-K (weight stays resident over M loop)
                if vmem_bytes(tm, tn, tk) <= budget:
                    return tm, tn, tk
    return tm_cands[-1], tn_cands[-1], tk_cands[-1]


def _sorsa_linear_kernel(x_ref, w_ref, xa_ref, bst_ref, o_ref, acc_ref):
    """acc = (x@A^T) @ (scale*diag(S)@B^T)_tile + sum_k x_k @ W_k,tile ; f32 acc."""
    k = pl.program_id(2)

    @pl.when(k == 0)
    def _init():
        # Low-rank term: xa precomputed in the wrapper, stays in input dtype.
        acc_ref[...] = jnp.dot(xa_ref[...], bst_ref[...],
                               preferred_element_type=jnp.float32)

    acc_ref[...] += jnp.dot(x_ref[...], w_ref[...],
                            preferred_element_type=jnp.float32)

    @pl.when(k == pl.num_programs(2) - 1)
    def _store():
        o_ref[...] = acc_ref[...].astype(o_ref.dtype)


def sorsa_linear(x, weight, sorsa_A, sorsa_S, sorsa_B, scale):
    *lead, d = x.shape
    out_f, in_f = weight.shape
    # The module's `x @ weight` (weight stored (out, in)) is only consistent
    # with its own low-rank term when the weight is square.
    assert out_f == in_f, "SORSA Linear forward requires square weight (out == in)"
    assert d == in_f, "x feature dim must match in_features"
    r = int(sorsa_S.shape[0])
    n = in_f  # x @ weight -> output columns indexed by in_features (== out_features)

    m = int(np.prod(lead)) if lead else 1
    x2 = x.reshape(m, d)
    dtype = x.dtype
    in_item = jnp.dtype(dtype).itemsize
    out_item = in_item

    # Generation-aware VMEM budget: ~80% of physical, minus fixed headroom.
    cap = _vmem_capacity_bytes()
    vmem_limit = max(min(int(cap * 0.80), cap - 8 * 1024 * 1024), 16 * 1024 * 1024)
    tile_budget = int(vmem_limit * 0.85)   # leave room for Mosaic internal scratch

    n_pad = _round_up(n, 128)              # lane-dense output stores
    tm, tn, tk = _choose_tiles(m, d, n_pad, in_item, out_item, r, tile_budget)
    m_pad = _round_up(m, tm)

    w = weight.astype(dtype)
    # Fold scale * diag(S) into B^T once, outside the kernel:  (r, n)
    bst = (sorsa_B * (scale * sorsa_S)[None, :]).T.astype(dtype)
    if n_pad != n:
        w = jnp.pad(w, ((0, 0), (0, n_pad - n)))
        bst = jnp.pad(bst, ((0, 0), (0, n_pad - n)))
    if m_pad != m:
        x2 = jnp.pad(x2, ((0, m_pad - m), (0, 0)))

    # Hoisted rank-r projection: one tiny (m, r) matmul outside the hot loop.
    xa = jnp.dot(x2, sorsa_A.astype(dtype).T,
                 preferred_element_type=jnp.float32).astype(dtype)

    grid = (n_pad // tn, m_pad // tm, d // tk)   # N outer, M inner, K reduction last
    n_t, m_t, k_t = grid

    flops = 2 * m_pad * d * n_pad + 2 * m_pad * r * n_pad
    bytes_accessed = int(
        in_item * (n_t * m_pad * d                       # x re-read per N tile
                   + (m_t if k_t > 1 else 1) * d * n_pad  # weight (resident if k_t==1)
                   + n_t * m_pad * r + n_t * r * tn)      # xa / bst
        + out_item * m_pad * n_pad)

    out = pl.pallas_call(
        _sorsa_linear_kernel,
        out_shape=jax.ShapeDtypeStruct((m_pad, n_pad), dtype),
        grid=grid,
        in_specs=[
            pl.BlockSpec((tm, tk), lambda j, i, k: (i, k)),   # x tile
            pl.BlockSpec((tk, tn), lambda j, i, k: (k, j)),   # weight tile
            pl.BlockSpec((tm, r), lambda j, i, k: (i, 0)),    # x @ A^T (precomputed)
            pl.BlockSpec((r, tn), lambda j, i, k: (0, j)),    # scale*diag(S) @ B^T tile
        ],
        out_specs=pl.BlockSpec((tm, tn), lambda j, i, k: (i, j)),
        scratch_shapes=[pltpu.VMEM((tm, tn), jnp.float32)],
        compiler_params=pltpu.CompilerParams(
            dimension_semantics=("parallel", "parallel", "arbitrary"),
            vmem_limit_bytes=int(vmem_limit),
        ),
        cost_estimate=pl.CostEstimate(
            flops=flops, transcendentals=0, bytes_accessed=bytes_accessed),
    )(x2, w, xa, bst)

    if m_pad != m or n_pad != n:
        out = out[:m, :n]
    return out.reshape(*lead, n)


if __name__ == "__main__":
    # Module config: Linear(in_features=128, out_features=128, r=4, alpha=8.0, dropout=0.0)
    in_features = out_features = 128
    r = 4
    alpha = 8.0
    scale = alpha / r
    batch, seq = 2, 8

    key = jax.random.PRNGKey(0)
    kx, kw, ka, ks, kb = jax.random.split(key, 5)
    x = jax.random.normal(kx, (batch, seq, in_features), dtype=jnp.float32)
    weight = jax.random.normal(kw, (out_features, in_features), dtype=jnp.float32) * 0.02
    sorsa_A = jax.random.normal(ka, (r, in_features), dtype=jnp.float32) * 0.1
    sorsa_S = jax.random.uniform(ks, (r,), dtype=jnp.float32)
    sorsa_B = jax.random.normal(kb, (out_features, r), dtype=jnp.float32) * 0.1

    out = jax.block_until_ready(
        sorsa_linear(x, weight, sorsa_A, sorsa_S, sorsa_B, scale))

    # Pure-JAX reference mirroring the PyTorch forward exactly.
    sorsa_delta = (sorsa_B * sorsa_S[None, :]) @ sorsa_A * scale        # (out, in)
    ref = x @ weight + x @ sorsa_delta.T
    assert out.shape == (batch, seq, out_features)
    np.testing.assert_allclose(np.asarray(out), np.asarray(ref), rtol=1e-4, atol=1e-4)

    # Second check: exercises M padding (26 -> 32 tokens) and larger N/K tiling.
    d2 = 1024
    b2, s2 = 2, 13
    keys2 = jax.random.split(jax.random.PRNGKey(1), 5)
    x_b = jax.random.normal(keys2[0], (b2, s2, d2), dtype=jnp.float32)
    w_b = jax.random.normal(keys2[1], (d2, d2), dtype=jnp.float32) * 0.02
    a_b = jax.random.normal(keys2[2], (r, d2), dtype=jnp.float32) * 0.1
    s_b = jax.random.uniform(keys2[3], (r,), dtype=jnp.float32)
    b_b = jax.random.normal(keys2[4], (d2, r), dtype=jnp.float32) * 0.1
    out_b = jax.block_until_ready(sorsa_linear(x_b, w_b, a_b, s_b, b_b, scale))

    x64 = np.asarray(x_b, np.float64)
    delta64 = (np.asarray(b_b, np.float64) * np.asarray(s_b, np.float64)[None, :]) \
        @ np.asarray(a_b, np.float64) * scale
    ref_b = x64 @ np.asarray(w_b, np.float64) + x64 @ delta64.T
    assert out_b.shape == (b2, s2, d2)
    np.testing.assert_allclose(np.asarray(out_b, np.float64), ref_b, rtol=1e-2, atol=1e-2)

    print("KERNEL_OK")
</pallas_src>

<mosaic_0001>
module attributes {stable_mosaic.version = 11 : i64} {
  func.func @_sorsa_linear_kernel(%arg0: i32, %arg1: i32, %arg2: i32, %arg3: memref<16x128xf32, #tpu.memory_space<vmem>>, %arg4: memref<128x128xf32, #tpu.memory_space<vmem>>, %arg5: memref<16x4xf32, #tpu.memory_space<vmem>>, %arg6: memref<4x128xf32, #tpu.memory_space<vmem>>, %arg7: memref<16x128xf32, #tpu.memory_space<vmem>>, %arg8: memref<16x128xf32, #tpu.memory_space<vmem>>) attributes {dimension_semantics = [#tpu.dimension_semantics<parallel>, #tpu.dimension_semantics<parallel>, #tpu.dimension_semantics<arbitrary>], iteration_bounds = array<i64: 1, 1, 1>, scalar_prefetch = 0 : i64, scratch_operands = 1 : i64, tpu.core_type = #tpu.core_type<tc>, window_params = [{transform_indices = @transform_0, window_bounds = array<i64: 16, 128>}, {transform_indices = @transform_1, window_bounds = array<i64: 128, 128>}, {transform_indices = @transform_2, window_bounds = array<i64: 16, 4>}, {transform_indices = @transform_3, window_bounds = array<i64: 4, 128>}, {transform_indices = @transform_4, window_bounds = array<i64: 16, 128>}]} {
    %c0_i32 = arith.constant 0 : i32
    %0 = arith.cmpi eq, %arg2, %c0_i32 : i32
    %1 = arith.extui %0 : i1 to i32
    %c0_i32_0 = arith.constant 0 : i32
    %2 = arith.cmpi ne, %1, %c0_i32_0 : i32
    scf.if %2 {
      %c0_10 = arith.constant 0 : index
      %c0_11 = arith.constant 0 : index
      %12 = vector.load %arg5[%c0_10, %c0_11] : memref<16x4xf32, #tpu.memory_space<vmem>>, vector<16x4xf32>
      %c0_12 = arith.constant 0 : index
      %c0_13 = arith.constant 0 : index
      %13 = vector.load %arg6[%c0_12, %c0_13] : memref<4x128xf32, #tpu.memory_space<vmem>>, vector<4x128xf32>
      %cst_14 = arith.constant dense<0.000000e+00> : vector<16x128xf32>
      %14 = tpu.matmul %12, %13, %cst_14 {dimension_numbers = #tpu.dot_dimension_numbers<[1], [0], [0], [1], [0, 0, 1, 1], [], []>} : vector<16x4xf32>, vector<4x128xf32>, vector<16x128xf32> -> vector<16x128xf32>
      %c0_15 = arith.constant 0 : index
      %c0_16 = arith.constant 0 : index
      %15 = vector.load %arg8[%c0_15, %c0_16] : memref<16x128xf32, #tpu.memory_space<vmem>>, vector<16x128xf32>
      tpu.vector_store %arg8[%c0_15, %c0_16], %14 {strides = array<i32>} : memref<16x128xf32, #tpu.memory_space<vmem>>, vector<16x128xf32>,
    } else {
    }
    %c0 = arith.constant 0 : index
    %c0_1 = arith.constant 0 : index
    %3 = vector.load %arg8[%c0, %c0_1] : memref<16x128xf32, #tpu.memory_space<vmem>>, vector<16x128xf32>
    %c0_2 = arith.constant 0 : index
    %c0_3 = arith.constant 0 : index
    %4 = vector.load %arg3[%c0_2, %c0_3] : memref<16x128xf32, #tpu.memory_space<vmem>>, vector<16x128xf32>
    %c0_4 = arith.constant 0 : index
    %c0_5 = arith.constant 0 : index
    %5 = vector.load %arg4[%c0_4, %c0_5] : memref<128x128xf32, #tpu.memory_space<vmem>>, vector<128x128xf32>
    %cst = arith.constant dense<0.000000e+00> : vector<16x128xf32>
    %6 = tpu.matmul %4, %5, %cst {dimension_numbers = #tpu.dot_dimension_numbers<[1], [0], [0], [1], [0, 0, 1, 1], [], []>} : vector<16x128xf32>, vector<128x128xf32>, vector<16x128xf32> -> vector<16x128xf32>
    %7 = arith.addf %3, %6 : vector<16x128xf32>
    %c0_6 = arith.constant 0 : index
    %c0_7 = arith.constant 0 : index
    %8 = vector.load %arg8[%c0_6, %c0_7] : memref<16x128xf32, #tpu.memory_space<vmem>>, vector<16x128xf32>
    tpu.vector_store %arg8[%c0_6, %c0_7], %7 {strides = array<i32>} : memref<16x128xf32, #tpu.memory_space<vmem>>, vector<16x128xf32>,
    %c0_i32_8 = arith.constant 0 : i32
    %9 = arith.cmpi eq, %arg2, %c0_i32_8 : i32
    %10 = arith.extui %9 : i1 to i32
    %c0_i32_9 = arith.constant 0 : i32
    %11 = arith.cmpi ne, %10, %c0_i32_9 : i32
    scf.if %11 {
      %c0_10 = arith.constant 0 : index
      %c0_11 = arith.constant 0 : index
      %12 = vector.load %arg8[%c0_10, %c0_11] : memref<16x128xf32, #tpu.memory_space<vmem>>, vector<16x128xf32>
      %c0_12 = arith.constant 0 : index
      %c0_13 = arith.constant 0 : index
      %13 = vector.load %arg7[%c0_12, %c0_13] : memref<16x128xf32, #tpu.memory_space<vmem>>, vector<16x128xf32>
      tpu.vector_store %arg7[%c0_12, %c0_13], %12 {strides = array<i32>} : memref<16x128xf32, #tpu.memory_space<vmem>>, vector<16x128xf32>,
    } else {
    }
    return
  }
  func.func @transform_0(%arg0: i32, %arg1: i32, %arg2: i32) -> (i32, i32) {
    %c0_i32 = arith.constant 0 : i32
    return %arg1, %arg2 : i32, i32
  }
  func.func @transform_1(%arg0: i32, %arg1: i32, %arg2: i32) -> (i32, i32) {
    %c0_i32 = arith.constant 0 : i32
    return %arg2, %arg0 : i32, i32
  }
  func.func @transform_2(%arg0: i32, %arg1: i32, %arg2: i32) -> (i32, i32) {
    %c0_i32 = arith.constant 0 : i32
    %c0_i32_0 = arith.constant 0 : i32
    return %arg1, %c0_i32 : i32, i32
  }
  func.func @transform_3(%arg0: i32, %arg1: i32, %arg2: i32) -> (i32, i32) {
    %c0_i32 = arith.constant 0 : i32
    %c0_i32_0 = arith.constant 0 : i32
    return %c0_i32, %arg0 : i32, i32
  }
  func.func @transform_4(%arg0: i32, %arg1: i32, %arg2: i32) -> (i32, i32) {
    %c0_i32 = arith.constant 0 : i32
    return %arg1, %arg0 : i32, i32
  }
}

</mosaic_0001>

<bundles_post_ra>
// kernel: tpu_custom_call.1
= control target key start
LH: loop header
LB: loop body
LE: loop exit
PB: predicated region body
PF: predicated region fallthrough
CT: control target
= control target key end

     0   :  { %9 = vsyncpa [#allocation4], 0  ;;  %s283_s0 = inlined_call_operand.vmem [shape: f32[16,128], index: 0, kind: input, shape index: {}]   ;;  %s284_s1 = inlined_call_operand.hbm [shape: f32[128,128], index: 1, kind: input, shape index: {}]   ;;  %s285_s2 = inlined_call_operand.vmem [shape: f32[16,4], index: 2, kind: input, shape index: {}]   ;;  %s286_s3 = inlined_call_operand.vmem [shape: f32[4,128], index: 3, kind: input, shape index: {}]   ;;  %s287_s4 = inlined_call_operand.hbm [shape: f32[16,128], index: 4, kind: output, shape index: {}]  }
   0x1   :  { %10 = vsyncpa [#allocation5], 0  ;;  %s17_s17 = sshll.u32 %s284_s1, 4  ;;  %s225_s18 = smov [#allocation3]   ;;  %s18_s17 = int_to_ptr.hbm [resolvable:$true] %s17_s17 }
   0x2   :  { %s19_s19 = sshll.u32 %s225_s18, 4  ;;  %s226_s20 = smov 128   ;;  %s20_s19 = int_to_ptr.vmem [resolvable:$true] %s19_s19 }
   0x3   :  { %s227_s21 = smov 8  }
   0x4   :  { %25 = dma.hbm_to_vmem [thread:$0]  %s18_s17, 2048, %s20_s19, [#allocation4], %s226_s20, %s226_s20, %s227_s21  }
   0x5   :  { %221 = dma.done.wait [#allocation4], 2048  }
   0x6   :  { %222 = vsyncadd [#allocation4], 4294965248  ;;  %v96_v0 = vld [vmem:[#allocation3 + $0x78] sm:$0xff]  ;;  %v95_v1 = vld [vmem:[#allocation3 + $0x70] sm:$0xff]  ;;  %vm48_vm0 = vcmask 1043456   ;;  %vm41_vm1 = vcmask 31744  }
   0x7   :  { %97 = vmatpush.msra.mxu1 %v96_v0  ;;  %153 = vmatpush.msra.mxu2 %v96_v0  ;;  %v94_v2 = vld [vmem:[#allocation3 + $0x68] sm:$0xff]  ;;  %v93_v3 = vld [vmem:[#allocation3 + $0x60] sm:$0xff]  ;;  %v92_v6 = vld [vmem:[#allocation3 + $0x58] sm:$0xff]  ;;  %s228_s29 = smov [#allocation6]   ;;  %s137_s7 = sshll.u32 %s287_s4, 4  ;;  %s138_s7 = int_to_ptr.hbm [resolvable:$true] %s137_s7 }
   0x8   :  { %v40_v4 = vld [vmem:[%s286_s3] sm:$0xf]  ;;  %v91_v7 = vld [vmem:[#allocation3 + $0x50] sm:$0xff]  ;;  %v90_v8 = vld [vmem:[#allocation3 + $0x48] sm:$0xff]  ;;  %s135_s30 = sshll.u32 %s228_s29, 4  ;;  %s136_s30 = int_to_ptr.vmem [resolvable:$true] %s135_s30 }
   0x9   :  { %98 = vmatpush.msra.mxu1 %v95_v1  ;;  %154 = vmatpush.msra.mxu2 %v95_v1  ;;  %v38_v5 = vld [vmem:[%s285_s2] sm:$0xff]  ;;  %v39_v10 = vld [vmem:[%s285_s2 + $0x8] sm:$0xff]  ;;  %v88_v11 = vld [vmem:[#allocation3 + $0x38] sm:$0xff] }
   0xa   :  { %150 = vmatpush.msk.msra.mxu0 %vm48_vm0, %v40_v4  ;;  %v89_v9 = vld [vmem:[#allocation3 + $0x40] sm:$0xff]  ;;  %v87_v12 = vld [vmem:[#allocation3 + $0x30] sm:$0xff]  ;;  %v86_v13 = vld [vmem:[#allocation3 + $0x28] sm:$0xff] }
   0xb   :  { %99 = vmatpush.msra.mxu1 %v94_v2  ;;  %155 = vmatpush.msra.mxu2 %v94_v2  ;;  %v85_v14 = vld [vmem:[#allocation3 + $0x20] sm:$0xff]  ;;  %v84_v15 = vld [vmem:[#allocation3 + $0x18] sm:$0xff]  ;;  %v83_v16 = vld [vmem:[#allocation3 + $0x10] sm:$0xff] }
   0xc   :  { %151 = vmatmul.msk.f32.vlgmr.msra.gmra.mxu0 %vm41_vm1, %v38_v5  ;;  %v82_v17 = vld [vmem:[#allocation3 + $0x8] sm:$0xff]  ;;  %v81_v18 = vld [vmem:[#allocation3] sm:$0xff] }
   0xd   :  { %100 = vmatpush.msra.mxu1 %v93_v3  ;;  %156 = vmatpush.msra.mxu2 %v93_v3  ;;  %v79_v19 = vld [vmem:[%s283_s0] sm:$0xff]  ;;  %v80_v20 = vld [vmem:[%s283_s0 + $0x8] sm:$0xff] }
   0xf   :  { %101 = vmatpush.msra.mxu1 %v92_v6  ;;  %157 = vmatpush.msra.mxu2 %v92_v6 }
  0x11   :  { %102 = vmatpush.msra.mxu1 %v91_v7  ;;  %158 = vmatpush.msra.mxu2 %v91_v7 }
  0x13   :  { %103 = vmatpush.msra.mxu1 %v90_v8  ;;  %159 = vmatpush.msra.mxu2 %v90_v8 }
  0x14   :  { %152 = vmatmul.msk.f32.gmra.mxu0 %vm41_vm1, %v39_v10 }
  0x15   :  { %104 = vmatpush.msra.mxu1 %v89_v9  ;;  %160 = vmatpush.msra.mxu2 %v89_v9 }
  0x17   :  { %105 = vmatpush.msra.mxu1 %v88_v11  ;;  %161 = vmatpush.msra.mxu2 %v88_v11 }
  0x19   :  { %106 = vmatpush.msra.mxu1 %v87_v12  ;;  %162 = vmatpush.msra.mxu2 %v87_v12 }
  0x1b   :  { %107 = vmatpush.msra.mxu1 %v86_v13  ;;  %163 = vmatpush.msra.mxu2 %v86_v13 }
  0x1d   :  { %108 = vmatpush.msra.mxu1 %v85_v14  ;;  %164 = vmatpush.msra.mxu2 %v85_v14 }
  0x1f   :  { %109 = vmatpush.msra.mxu1 %v84_v15  ;;  %165 = vmatpush.msra.mxu2 %v84_v15 }
  0x21   :  { %110 = vmatpush.msra.mxu1 %v83_v16  ;;  %166 = vmatpush.msra.mxu2 %v83_v16 }
  0x23   :  { %111 = vmatpush.msra.mxu1 %v82_v17  ;;  %167 = vmatpush.msra.mxu2 %v82_v17 }
  0x25   :  { %112 = vmatpush.msra.mxu1 %v81_v18  ;;  %168 = vmatpush.msra.mxu2 %v81_v18 }
  0x26   :  { %113 = vmatmul.f32.vlgmr.msra.gmra.mxu1 %v79_v19  ;;  %116 = vmatmul.f32.vlgmr.msra.gmra.mxu2 %v80_v20 }
  0x89   :  { %v69_v21 = vpop.f32.mrf.mxu0 }
  0x91   :  { %v72_v24 = vpop.f32.mrf.mxu0 }
  0xa3   :  { %v114_v22 = vpop.f32.mrf.mxu1 }
  0xa4   :  { %v120_v23 = vadd.f32 %v114_v22, %v69_v21 }
  0xa6   :  { %129 = vst [vmem:[#allocation6] sm:$0xff] %v120_v23 }
  0xa9   :  { %v117_v25 = vpop.f32.mrf.mxu2 }
  0xaa   :  { %v121_v26 = vadd.f32 %v117_v25, %v72_v24 }
  0xac   :  { %130 = vst [vmem:[#allocation6 + $0x8] sm:$0xff] %v121_v26 }
  0xad   :  { %143 = dma.vmem_to_hbm [thread:$0]  %s136_s30, 256, %s138_s7, [#allocation5], %s226_s20, %s226_s20, %s227_s21  }
  0xae   :  { %223 = dma.done.wait [#allocation5], 256  }
  0xaf   :  { %224 = vsyncadd [#allocation5], 4294967040 }
  0xb0   :  { %148 = vsyncpa [#allocation4], 1 }
  0xb1   :  { %149 = vsyncpa [#allocation5], 1 }

</bundles_post_ra>
